<compile_context>
chip_gen: v7x
topology: tpu7x:2x2x1
jax: 0.10.0
libtpu: 0.0.40
codegen_flags: <defaults>
</compile_context>

<pallas_src>
import functools

import jax
import jax.numpy as jnp
from jax import lax
from jax.experimental import pallas as pl
from jax.experimental.pallas import tpu as pltpu


# ----------------------------------------------------------------------------- utils
def _round_up(v, m):
    return ((v + m - 1) // m) * m


def _pick_chunk(nc, h, w, itemsize, target_bytes=2 << 20):
    """Rows of (H, W) per grid step so one lane/sublane-padded x block ~ target."""
    per_row = _round_up(h, 8) * _round_up(w, 128) * max(itemsize, 4)
    cap = max(1, target_bytes // per_row)
    return max(1, min(nc, cap))


# ------------------------------------------------------------------------- kernel 1
def _pool_kernel(x_ref, xh_ref, xw_ref):
    x = x_ref[...].astype(jnp.float32)                                    # (bc, H, W)
    xh_ref[...] = jnp.mean(x, axis=2, keepdims=True).astype(xh_ref.dtype) # (bc, H, 1)
    xw_ref[...] = jnp.mean(x, axis=1, keepdims=True).astype(xw_ref.dtype) # (bc, 1, W)


# ------------------------------------------------------------------------- kernel 2
def _bottleneck_kernel(yh_ref, yw_ref, w1_ref, b1_ref, g_ref, bt_ref, mu_ref, vr_ref,
                       wh_ref, bh_ref, ww_ref, bw_ref, ah_ref, aw_ref, *, eps):
    inv = lax.rsqrt(vr_ref[...] + eps) * g_ref[...]          # (1, Mp) folded BN scale

    def branch(y2, wo_ref, bo_ref):
        z = jnp.dot(y2, w1_ref[...], preferred_element_type=jnp.float32) + b1_ref[...]
        z = (z - mu_ref[...]) * inv + bt_ref[...]            # BatchNorm (inference)
        z = z * (jnp.clip(z + 3.0, 0.0, 6.0) * (1.0 / 6.0))  # h_swish
        a = jnp.dot(z, wo_ref[...], preferred_element_type=jnp.float32) + bo_ref[...]
        return 1.0 / (1.0 + jnp.exp(-a))                     # sigmoid

    ah_ref[...] = branch(yh_ref[...].astype(jnp.float32), wh_ref, bh_ref).astype(ah_ref.dtype)
    aw_ref[...] = branch(yw_ref[...].astype(jnp.float32), ww_ref, bw_ref).astype(aw_ref.dtype)


# ------------------------------------------------------------------------- kernel 3
def _reweight_kernel(x_ref, ah_ref, aw_ref, o_ref):
    x = x_ref[...].astype(jnp.float32)                                    # (bc, H, W)
    o_ref[...] = (x * ah_ref[...] * aw_ref[...]).astype(o_ref.dtype)


# ------------------------------------------------------------------------- wrapper
def coord_att_forward(x, params, *, eps=1e-5):
    n, c, h, w = x.shape
    mip = params['w1'].shape[0]
    oup = params['wh'].shape[0]
    assert oup == c, "CoordAtt re-weighting requires oup == inp (PyTorch broadcast)"

    nc = n * c
    x3 = x.reshape(nc, h, w)                                  # metadata-only reshape
    bc = _pick_chunk(nc, h, w, jnp.dtype(x.dtype).itemsize)
    grid = (pl.cdiv(nc, bc),)
    cparams = pltpu.CompilerParams(dimension_semantics=("parallel",),
                                   vmem_limit_bytes=32 << 20)

    # --- kernel 1: fused H/W average pooling (single pass over x) ---
    pooled_h, pooled_w = pl.pallas_call(
        _pool_kernel,
        out_shape=(jax.ShapeDtypeStruct((nc, h, 1), jnp.float32),
                   jax.ShapeDtypeStruct((nc, 1, w), jnp.float32)),
        grid_spec=pltpu.PrefetchScalarGridSpec(
            num_scalar_prefetch=0,
            grid=grid,
            in_specs=[pl.BlockSpec((bc, h, w), lambda i: (i, 0, 0))],
            out_specs=(pl.BlockSpec((bc, h, 1), lambda i: (i, 0, 0)),
                       pl.BlockSpec((bc, 1, w), lambda i: (i, 0, 0))),
        ),
        compiler_params=cparams,
    )(x3)

    # --- kernel 2: conv1 + BN + h_swish + conv_h/conv_w + sigmoid on pooled tensors ---
    cp = _round_up(c, 128)
    mp = _round_up(mip, 128)
    op_ = _round_up(oup, 128)

    # Tiny tensors: layout plumbing (transpose/pad) done at the JAX level is cheap.
    yh = pooled_h.reshape(n, c, h).transpose(0, 2, 1).reshape(n * h, c)
    yw = pooled_w.reshape(n, c, w).transpose(0, 2, 1).reshape(n * w, c)
    yh_p = jnp.pad(yh, ((0, 0), (0, cp - c)))
    yw_p = jnp.pad(yw, ((0, 0), (0, cp - c)))

    f32 = jnp.float32
    w1t = jnp.pad(params['w1'].T.astype(f32), ((0, cp - c), (0, mp - mip)))
    b1p = jnp.pad(params['b1'].astype(f32), (0, mp - mip)).reshape(1, mp)
    gp  = jnp.pad(params['bn_gamma'].astype(f32), (0, mp - mip)).reshape(1, mp)
    btp = jnp.pad(params['bn_beta'].astype(f32),  (0, mp - mip)).reshape(1, mp)
    mup = jnp.pad(params['bn_mean'].astype(f32),  (0, mp - mip)).reshape(1, mp)
    vrp = jnp.pad(params['bn_var'].astype(f32),   (0, mp - mip),
                  constant_values=1.0).reshape(1, mp)
    wht = jnp.pad(params['wh'].T.astype(f32), ((0, mp - mip), (0, op_ - oup)))
    bhp = jnp.pad(params['bh'].astype(f32), (0, op_ - oup)).reshape(1, op_)
    wwt = jnp.pad(params['ww'].T.astype(f32), ((0, mp - mip), (0, op_ - oup)))
    bwp = jnp.pad(params['bw'].astype(f32), (0, op_ - oup)).reshape(1, op_)

    ah_p, aw_p = pl.pallas_call(
        functools.partial(_bottleneck_kernel, eps=eps),
        out_shape=(jax.ShapeDtypeStruct((n * h, op_), jnp.float32),
                   jax.ShapeDtypeStruct((n * w, op_), jnp.float32)),
    )(yh_p, yw_p, w1t, b1p, gp, btp, mup, vrp, wht, bhp, wwt, bwp)

    a_h = ah_p[:, :oup].reshape(n, h, oup).transpose(0, 2, 1).reshape(n * oup, h, 1)
    a_w = aw_p[:, :oup].reshape(n, w, oup).transpose(0, 2, 1).reshape(n * oup, 1, w)

    # --- kernel 3: out = x * a_h * a_w (one read + one write of x) ---
    out3 = pl.pallas_call(
        _reweight_kernel,
        out_shape=jax.ShapeDtypeStruct((nc, h, w), x.dtype),
        grid_spec=pltpu.PrefetchScalarGridSpec(
            num_scalar_prefetch=0,
            grid=grid,
            in_specs=[pl.BlockSpec((bc, h, w), lambda i: (i, 0, 0)),
                      pl.BlockSpec((bc, h, 1), lambda i: (i, 0, 0)),
                      pl.BlockSpec((bc, 1, w), lambda i: (i, 0, 0))],
            out_specs=pl.BlockSpec((bc, h, w), lambda i: (i, 0, 0)),
        ),
        compiler_params=cparams,
    )(x3, a_h, a_w)

    return out3.reshape(n, c, h, w)


# ------------------------------------------------------------------- params & reference
def init_params(key, inp, oup, reduction=32):
    mip = max(8, inp // reduction)
    k1, k2, k3 = jax.random.split(key, 3)

    def kaiming(k, shape, fan_in):
        return jax.random.normal(k, shape, jnp.float32) * jnp.sqrt(2.0 / fan_in)

    return dict(
        w1=kaiming(k1, (mip, inp), inp), b1=jnp.zeros((mip,), jnp.float32),
        bn_gamma=jnp.ones((mip,), jnp.float32), bn_beta=jnp.zeros((mip,), jnp.float32),
        bn_mean=jnp.zeros((mip,), jnp.float32), bn_var=jnp.ones((mip,), jnp.float32),
        wh=kaiming(k2, (oup, mip), mip), bh=jnp.zeros((oup,), jnp.float32),
        ww=kaiming(k3, (oup, mip), mip), bw=jnp.zeros((oup,), jnp.float32),
    )


def coord_att_ref(x, p, eps=1e-5):
    n, c, h, w = x.shape
    hi = jax.lax.Precision.HIGHEST
    x_h = jnp.mean(x, axis=3)                                # (n, c, h)
    x_w = jnp.mean(x, axis=2)                                # (n, c, w)
    y = jnp.concatenate([x_h, x_w], axis=2)                  # (n, c, h+w)
    y = jnp.einsum('mc,ncl->nml', p['w1'], y, precision=hi) + p['b1'][None, :, None]
    inv = 1.0 / jnp.sqrt(p['bn_var'] + eps)
    y = (y - p['bn_mean'][None, :, None]) * (inv * p['bn_gamma'])[None, :, None] \
        + p['bn_beta'][None, :, None]
    y = y * jnp.clip(y + 3.0, 0.0, 6.0) / 6.0                # h_swish
    yh, yw = y[:, :, :h], y[:, :, h:]
    a_h = jax.nn.sigmoid(jnp.einsum('om,nml->nol', p['wh'], yh, precision=hi)
                         + p['bh'][None, :, None])           # (n, oup, h)
    a_w = jax.nn.sigmoid(jnp.einsum('om,nml->nol', p['ww'], yw, precision=hi)
                         + p['bw'][None, :, None])           # (n, oup, w)
    return x * a_h[:, :, :, None] * a_w[:, :, None, :]


# TODO(synk): BatchNorm is implemented in inference mode (running statistics);
#             PyTorch's default training-mode batch statistics are not computed.

if __name__ == "__main__":
    key = jax.random.PRNGKey(0)
    kx, kp = jax.random.split(key)
    N, C, H, W = 2, 4, 16, 16
    x = jax.random.normal(kx, (N, C, H, W), dtype=jnp.float32)
    params = init_params(kp, C, C, reduction=32)

    out = coord_att_forward(x, params)
    out = jax.block_until_ready(out)

    ref = coord_att_ref(x, params)
    assert out.shape == x.shape and out.dtype == x.dtype
    assert jnp.allclose(out, ref, atol=1e-4, rtol=1e-4), \
        float(jnp.max(jnp.abs(out - ref)))

    print("KERNEL_OK")
</pallas_src>

<mosaic_0001>
module attributes {stable_mosaic.version = 11 : i64} {
  func.func @_pool_kernel(%arg0: i32, %arg1: memref<8x16x16xf32, #tpu.memory_space<vmem>>, %arg2: memref<8x16x1xf32, #tpu.memory_space<vmem>>, %arg3: memref<8x1x16xf32, #tpu.memory_space<vmem>>) attributes {dimension_semantics = [#tpu.dimension_semantics<parallel>], iteration_bounds = array<i64: 1>, scalar_prefetch = 0 : i64, scratch_operands = 0 : i64, tpu.core_type = #tpu.core_type<tc>, window_params = [{transform_indices = @transform_0, window_bounds = array<i64: 8, 16, 16>}, {transform_indices = @transform_1, window_bounds = array<i64: 8, 16, 1>}, {transform_indices = @transform_2, window_bounds = array<i64: 8, 1, 16>}]} {
    %c0 = arith.constant 0 : index
    %c0_0 = arith.constant 0 : index
    %c0_1 = arith.constant 0 : index
    %0 = vector.load %arg1[%c0, %c0_0, %c0_1] : memref<8x16x16xf32, #tpu.memory_space<vmem>>, vector<8x16x16xf32>
    %cst = arith.constant dense<0.000000e+00> : vector<8x16xf32>
    %1 = vector.multi_reduction <add>, %0, %cst [2] : vector<8x16x16xf32> to vector<8x16xf32>
    %2 = vector.shape_cast %1 : vector<8x16xf32> to vector<8x16x1xf32>
    %cst_2 = arith.constant 1.600000e+01 : f32
    %3 = vector.broadcast %cst_2 : f32 to vector<8x16x1xf32>
    %4 = arith.divf %2, %3 : vector<8x16x1xf32>
    %c0_3 = arith.constant 0 : index
    %c0_4 = arith.constant 0 : index
    %c0_5 = arith.constant 0 : index
    %5 = vector.load %arg2[%c0_3, %c0_4, %c0_5] : memref<8x16x1xf32, #tpu.memory_space<vmem>>, vector<8x16x1xf32>
    tpu.vector_store %arg2[%c0_3, %c0_4, %c0_5], %4 {strides = array<i32>} : memref<8x16x1xf32, #tpu.memory_space<vmem>>, vector<8x16x1xf32>,
    %cst_6 = arith.constant dense<0.000000e+00> : vector<8x16xf32>
    %6 = vector.multi_reduction <add>, %0, %cst_6 [1] : vector<8x16x16xf32> to vector<8x16xf32>
    %7 = vector.shape_cast %6 : vector<8x16xf32> to vector<8x1x16xf32>
    %cst_7 = arith.constant 1.600000e+01 : f32
    %8 = vector.broadcast %cst_7 : f32 to vector<8x1x16xf32>
    %9 = arith.divf %7, %8 : vector<8x1x16xf32>
    %c0_8 = arith.constant 0 : index
    %c0_9 = arith.constant 0 : index
    %c0_10 = arith.constant 0 : index
    %10 = vector.load %arg3[%c0_8, %c0_9, %c0_10] : memref<8x1x16xf32, #tpu.memory_space<vmem>>, vector<8x1x16xf32>
    tpu.vector_store %arg3[%c0_8, %c0_9, %c0_10], %9 {strides = array<i32>} : memref<8x1x16xf32, #tpu.memory_space<vmem>>, vector<8x1x16xf32>,
    return
  }
  func.func @transform_0(%arg0: i32) -> (i32, i32, i32) {
    %c0_i32 = arith.constant 0 : i32
    %c0_i32_0 = arith.constant 0 : i32
    %c0_i32_1 = arith.constant 0 : i32
    return %arg0, %c0_i32, %c0_i32_0 : i32, i32, i32
  }
  func.func @transform_1(%arg0: i32) -> (i32, i32, i32) {
    %c0_i32 = arith.constant 0 : i32
    %c0_i32_0 = arith.constant 0 : i32
    %c0_i32_1 = arith.constant 0 : i32
    return %arg0, %c0_i32, %c0_i32_0 : i32, i32, i32
  }
  func.func @transform_2(%arg0: i32) -> (i32, i32, i32) {
    %c0_i32 = arith.constant 0 : i32
    %c0_i32_0 = arith.constant 0 : i32
    %c0_i32_1 = arith.constant 0 : i32
    return %arg0, %c0_i32, %c0_i32_0 : i32, i32, i32
  }
}

</mosaic_0001>

<bundles_post_ra>
// kernel: tpu_custom_call.1
= control target key start
LH: loop header
LB: loop body
LE: loop exit
PB: predicated region body
PF: predicated region fallthrough
CT: control target
= control target key end

     0   :  { %8 = vsyncpa [#allocation3], 0  ;;  %s433_s0 = inlined_call_operand.hbm [shape: f32[8,16,16], index: 0, kind: input, shape index: {}]   ;;  %s434_s1 = inlined_call_operand.vmem [shape: f32[8,16,1], index: 1, kind: output, shape index: {0}]   ;;  %s435_s2 = inlined_call_operand.hbm [shape: f32[8,1,16], index: 2, kind: output, shape index: {1}]  }
   0x1   :  { %9 = vsyncpa [#allocation4], 0  ;;  %s272_s9 = smov [#allocation2]   ;;  %s224_s13 = scalar_lea.hbm %s433_s0, 2048 }
   0x2   :  { %s15_s10 = sshll.u32 %s272_s9, 4  ;;  %p225_p0 = scmp.ne.s32.totalorder %s433_s0, %s224_s13  ;;  %s16_s10 = int_to_ptr.vmem [resolvable:$true] %s15_s10 }
   0x3   :  { %p228_p1 = scmp.lt.u32.totalorder %s224_s13, %s433_s0 }
   0x5   :  { %p230_p2 = pnand %p228_p1, %p225_p0 }
   0x7   :  { %233 = shalt.err (!%p230_p2)
}
   0x8   :  { %s234_s18 = scalar_lea.vmem %s16_s10, 2048  ;;  %p239_p4 = scmp.lt.s32.totalorder %s16_s10, %s16_s10 }
   0x9   :  { %p235_p3 = scmp.ne.s32.totalorder %s16_s10, %s234_s18  ;;  %p240_p5 = scmp.lt.s32.totalorder %s234_s18, %s234_s18 }
   0xb   :  { %p241_p6 = por %p240_p5, %p239_p4 }
   0xd   :  { %p242_p7 = pnand %p241_p6, %p235_p3 }
   0xf   :  { %245 = shalt.err (!%p242_p7)
}
  0x10   :  { %s273_s19 = smov 128   ;;  %s274_s20 = smov 8  }
  0x11   :  { %21 = dma.hbm_to_vmem [thread:$0]  %s433_s0, 2048, %s16_s10, [#allocation3], %s273_s19, %s273_s19, %s274_s20  }
  0x12   :  { %268 = dma.done.wait [#allocation3], 2048  }
  0x13   :  { %269 = vsyncadd [#allocation3], 4294965248  ;;  %vm41_vm0 = vcmask 130048   ;;  %v27_v0 = vld [vmem:[#allocation2 + $0x10] sm:$0xff]  ;;  %v25_v1 = vld [vmem:[#allocation2] sm:$0xff]  ;;  %vm188_vm1 = vcmask 122880  }
  0x14   :  { %v28_v2 = vld [vmem:[#allocation2 + $0x18] sm:$0xff]  ;;  %v48_v3 = vsel %vm41_vm0, %v27_v0, 0.0  ;;  %v42_v4 = vsel %vm41_vm0, %v25_v1, 0.0  ;;  %v26_v6 = vld [vmem:[#allocation2 + $0x8] sm:$0xff]  ;;  %v29_v8 = vld [vmem:[#allocation2 + $0x20] sm:$0xff]  ;;  %s275_s0 = smov [#allocation5]  }
  0x15   :  { %v51_v5 = vsel %vm41_vm0, %v28_v2, 0.0  ;;  %v30_v7 = vld [vmem:[#allocation2 + $0x28] sm:$0xff]  ;;  %49 = vadd.xlane.f32.xlu1 %v48_v3  ;;  %43 = vadd.xlane.f32.xlu0 %v42_v4  ;;  %v45_v10 = vsel %vm41_vm0, %v26_v6, 0.0  ;;  %v54_v12 = vsel %vm41_vm0, %v29_v8, 0.0  ;;  %v32_v13 = vld [vmem:[#allocation2 + $0x38] sm:$0xff]  ;;  %v31_v14 = vld [vmem:[#allocation2 + $0x30] sm:$0xff] }
  0x16   :  { %v131_v9 = vadd.f32 %v51_v5, %v48_v3  ;;  %v57_v11 = vsel %vm41_vm0, %v30_v7, 0.0  ;;  %v34_v15 = vld [vmem:[#allocation2 + $0x48] sm:$0xff]  ;;  %v124_v16 = vadd.f32 %v45_v10, %v42_v4  ;;  %v63_v18 = vsel %vm41_vm0, %v32_v13, 0.0  ;;  %v33_v20 = vld [vmem:[#allocation2 + $0x40] sm:$0xff]  ;;  %v36_v21 = vld [vmem:[#allocation2 + $0x58] sm:$0xff]  ;;  %s204_s23 = sshll.u32 %s275_s0, 4  ;;  %s205_s23 = int_to_ptr.vmem [resolvable:$true] %s204_s23 }
  0x17   :  { %v138_v17 = vadd.f32 %v57_v11, %v54_v12  ;;  %v60_v19 = vsel %vm41_vm0, %v31_v14, 0.0  ;;  %v35_v22 = vld [vmem:[#allocation2 + $0x50] sm:$0xff]  ;;  %v314_v25 = vsel %vm41_vm0, %v34_v15, 0.0  ;;  %v317_v26 = vsel %vm41_vm0, %v33_v20, 0.0  ;;  %v38_v27 = vld [vmem:[#allocation2 + $0x68] sm:$0xff]  ;;  %v37_v32 = vld [vmem:[#allocation2 + $0x60] sm:$0xff]  ;;  %p251_p9 = scmp.lt.s32.totalorder %s205_s23, %s205_s23 }
  0x18   :  { %v132_v23 = vrot.slane %v131_v9, 4  ;;  %v145_v24 = vadd.f32 %v63_v18, %v60_v19  ;;  %v125_v28 = vrot.slane %v124_v16, 4  ;;  %v152_v30 = vadd.f32 %v314_v25, %v317_v26  ;;  %v40_v33 = vld [vmem:[#allocation2 + $0x78] sm:$0xff]  ;;  %v39_v42 = vld [vmem:[#allocation2 + $0x70] sm:$0xff]  ;;  %s246_s24 = scalar_lea.vmem %s205_s23, 128 }
  0x19   :  { %v139_v29 = vrot.slane %v138_v17, 4  ;;  %v322_v31 = vsel %vm41_vm0, %v36_v21, 0.0  ;;  %52 = vadd.xlane.f32.xlu1 %v51_v5  ;;  %46 = vadd.xlane.f32.xlu0 %v45_v10  ;;  %v325_v36 = vsel %vm41_vm0, %v35_v22, 0.0  ;;  %v328_v37 = vsel %vm41_vm0, %v38_v27, 0.0  ;;  %p247_p8 = scmp.ne.s32.totalorder %s205_s23, %s246_s24  ;;  %p252_p10 = scmp.lt.s32.totalorder %s246_s24, %s246_s24 }
  0x1a   :  { %v133_v34 = vadd.f32 %v132_v23, %v131_v9  ;;  %v146_v35 = vrot.slane %v145_v24, 4  ;;  %v126_v38 = vadd.f32 %v125_v28, %v124_v16  ;;  %v153_v40 = vrot.slane %v152_v30, 4 }
  0x1b   :  { %v140_v39 = vadd.f32 %v139_v29, %v138_v17  ;;  %v159_v41 = vadd.f32 %v322_v31, %v325_v36  ;;  %v333_v45 = vsel %vm41_vm0, %v37_v32, 0.0  ;;  %v336_v46 = vsel %vm41_vm0, %v40_v33, 0.0  ;;  %p253_p11 = por %p252_p10, %p251_p9 }
  0x1c   :  { %v134_v43 = vrot.slane %v133_v34, 2  ;;  %v147_v44 = vadd.f32 %v146_v35, %v145_v24  ;;  %v127_v47 = vrot.slane %v126_v38, 2  ;;  %v154_v49 = vadd.f32 %v153_v40, %v152_v30 }
  0x1d   :  { %v141_v48 = vrot.slane %v140_v39, 2  ;;  %v160_v50 = vrot.slane %v159_v41, 4  ;;  %58 = vadd.xlane.f32.xlu1 %v57_v11  ;;  %55 = vadd.xlane.f32.xlu0 %v54_v12  ;;  %v166_v53 = vadd.f32 %v328_v37, %v333_v45  ;;  %v84_v54 = vsel %vm41_vm0, %v39_v42, 0.0  ;;  %p254_p12 = pnand %p253_p11, %p247_p8 }
  0x1e   :  { %v135_v51 = vadd.f32 %v134_v43, %v133_v34  ;;  %v148_v52 = vrot.slane %v147_v44, 2  ;;  %v128_v55 = vadd.f32 %v127_v47, %v126_v38  ;;  %v155_v57 = vrot.slane %v154_v49, 2 }
  0x1f   :  { %v142_v56 = vadd.f32 %v141_v48, %v140_v39  ;;  %v161_v58 = vadd.f32 %v160_v50, %v159_v41  ;;  %v167_v61 = vrot.slane %v166_v53, 4  ;;  %v173_v62 = vadd.f32 %v336_v46, %v84_v54 }
  0x20   :  { %v136_v59 = vrot.slane %v135_v51, 1  ;;  %v149_v60 = vadd.f32 %v148_v52, %v147_v44  ;;  %v129_v63 = vrot.slane %v128_v55, 1  ;;  %v156_v1 = vadd.f32 %v155_v57, %v154_v49 }
  0x21   :  { %v143_v0 = vrot.slane %v142_v56, 1  ;;  %v162_v2 = vrot.slane %v161_v58, 2  ;;  %64 = vadd.xlane.f32.xlu1 %v63_v18  ;;  %61 = vadd.xlane.f32.xlu0 %v60_v19  ;;  %v168_v5 = vadd.f32 %v167_v61, %v166_v53  ;;  %v174_v6 = vrot.slane %v173_v62, 4 }
  0x22   :  { %v137_v3 = vadd.f32 %v136_v59, %v135_v51  ;;  %v150_v4 = vrot.slane %v149_v60, 1  ;;  %v130_v7 = vadd.f32 %v129_v63, %v128_v55  ;;  %v157_v9 = vrot.slane %v156_v1, 1 }
  0x23   :  { %v144_v8 = vadd.f32 %v143_v0, %v142_v56  ;;  %v163_v10 = vadd.f32 %v162_v2, %v161_v58  ;;  %v169_v13 = vrot.slane %v168_v5, 2  ;;  %v175_v14 = vadd.f32 %v174_v6, %v173_v62 }
  0x24   :  { %v181_v11 = vmul.f32 0.0625, %v137_v3  ;;  %v151_v12 = vadd.f32 %v150_v4, %v149_v60  ;;  %v180_v15 = vmul.f32 0.0625, %v130_v7  ;;  %v158_v17 = vadd.f32 %v157_v9, %v156_v1 }
  0x25   :  { %v182_v16 = vmul.f32 0.0625, %v144_v8  ;;  %v164_v20 = vrot.slane %v163_v10, 1  ;;  %70 = vadd.xlane.f32.xlu1 %v314_v25  ;;  %67 = vadd.xlane.f32.xlu0 %v317_v26  ;;  %v170_v18 = vadd.f32 %v169_v13, %v168_v5  ;;  %v176_v19 = vrot.slane %v175_v14, 2 }
  0x26   :  { %190 = vst.msk [vmem:[#allocation5 + $0x1] sm:$0x1] %vm188_vm1, %v181_v11  ;;  %v183_v21 = vmul.f32 0.0625, %v151_v12  ;;  %189 = vst.msk [vmem:[#allocation5] sm:$0x1] %vm188_vm1, %v180_v15  ;;  %v184_v22 = vmul.f32 0.0625, %v158_v17 }
  0x27   :  { %191 = vst.msk [vmem:[#allocation5 + $0x2] sm:$0x1] %vm188_vm1, %v182_v16  ;;  %v165_v23 = vadd.f32 %v164_v20, %v163_v10  ;;  %v171_v24 = vrot.slane %v170_v18, 1  ;;  %v177_v27 = vadd.f32 %v176_v19, %v175_v14 }
  0x28   :  { %192 = vst.msk [vmem:[#allocation5 + $0x3] sm:$0x1] %vm188_vm1, %v183_v21  ;;  %193 = vst.msk [vmem:[#allocation5 + $0x4] sm:$0x1] %vm188_vm1, %v184_v22 }
  0x29   :  { %v185_v28 = vmul.f32 0.0625, %v165_v23  ;;  %76 = vadd.xlane.f32.xlu1 %v322_v31  ;;  %73 = vadd.xlane.f32.xlu0 %v325_v36  ;;  %v172_v25 = vadd.f32 %v171_v24, %v170_v18  ;;  %v178_v26 = vrot.slane %v177_v27, 1 }
  0x2b   :  { %194 = vst.msk [vmem:[#allocation5 + $0x5] sm:$0x1] %vm188_vm1, %v185_v28  ;;  %v186_v29 = vmul.f32 0.0625, %v172_v25  ;;  %v179_v30 = vadd.f32 %v178_v26, %v177_v27 }
  0x2d   :  { %82 = vadd.xlane.f32.xlu1 %v328_v37  ;;  %195 = vst.msk [vmem:[#allocation5 + $0x6] sm:$0x1] %vm188_vm1, %v186_v29  ;;  %79 = vadd.xlane.f32.xlu0 %v333_v45  ;;  %v187_v32 = vmul.f32 0.0625, %v179_v30 }
  0x2f   :  { %196 = vst.msk [vmem:[#allocation5 + $0x7] sm:$0x1] %vm188_vm1, %v187_v32 }
  0x31   :  { %88 = vadd.xlane.f32.xlu1 %v336_v46  ;;  %85 = vadd.xlane.f32.xlu0 %v84_v54 }
  0x32   :  { %257 = shalt.err (!%p254_p12)
}
  0x33   :  { %s258_s27 = scalar_lea.hbm %s435_s2, 128 }
  0x34   :  { %p259_p13 = scmp.ne.s32.totalorder %s435_s2, %s258_s27  ;;  %p262_p0 = scmp.lt.u32.totalorder %s258_s27, %s435_s2 }
  0x36   :  { %p264_p1 = pnand %p262_p0, %p259_p13 }
  0x38   :  { %267 = shalt.err (!%p264_p1)
}
  0x39   :  { %s276_s4 = smov 16   ;;  %s277_s5 = smov 1   ;;  %vm107_vm2 = vcmask 7168  }
  0x3a   :  { %210 = dma.vmem_to_hbm [thread:$0]  %s205_s23, 128, %s435_s2, [#allocation4], %s276_s4, %s276_s4, %s277_s5  }
  0xa2   :  { %v50_v31 = vpop.xlane.xlu1 %49  ;;  %v44_v33 = vpop.xlane.xlu0 %43 }
  0xa3   :  { %v93_v34 = vmul.f32 0.0625, %v50_v31  ;;  %v91_v35 = vmul.f32 0.0625, %v44_v33 }
  0xa5   :  { %110 = vst.msk [vmem:[%s434_s1 + $0x10] sm:$0xff] %vm107_vm2, %v93_v34  ;;  %108 = vst.msk [vmem:[%s434_s1] sm:$0xff] %vm107_vm2, %v91_v35 }
  0xa6   :  { %v53_v36 = vpop.xlane.xlu1 %52  ;;  %v47_v37 = vpop.xlane.xlu0 %46 }
  0xa7   :  { %v94_v38 = vmul.f32 0.0625, %v53_v36  ;;  %v92_v39 = vmul.f32 0.0625, %v47_v37 }
  0xa9   :  { %111 = vst.msk [vmem:[%s434_s1 + $0x18] sm:$0xff] %vm107_vm2, %v94_v38  ;;  %109 = vst.msk [vmem:[%s434_s1 + $0x8] sm:$0xff] %vm107_vm2, %v92_v39 }
  0xaa   :  { %v59_v40 = vpop.xlane.xlu1 %58  ;;  %v56_v41 = vpop.xlane.xlu0 %55 }
  0xab   :  { %v96_v42 = vmul.f32 0.0625, %v59_v40  ;;  %v95_v43 = vmul.f32 0.0625, %v56_v41 }
  0xad   :  { %113 = vst.msk [vmem:[%s434_s1 + $0x28] sm:$0xff] %vm107_vm2, %v96_v42  ;;  %112 = vst.msk [vmem:[%s434_s1 + $0x20] sm:$0xff] %vm107_vm2, %v95_v43 }
  0xae   :  { %v65_v44 = vpop.xlane.xlu1 %64  ;;  %v62_v45 = vpop.xlane.xlu0 %61 }
  0xaf   :  { %v98_v46 = vmul.f32 0.0625, %v65_v44  ;;  %v97_v47 = vmul.f32 0.0625, %v62_v45 }
  0xb1   :  { %115 = vst.msk [vmem:[%s434_s1 + $0x38] sm:$0xff] %vm107_vm2, %v98_v46  ;;  %114 = vst.msk [vmem:[%s434_s1 + $0x30] sm:$0xff] %vm107_vm2, %v97_v47 }
  0xb2   :  { %v71_v48 = vpop.xlane.xlu1 %70  ;;  %v68_v49 = vpop.xlane.xlu0 %67 }
  0xb3   :  { %v100_v50 = vmul.f32 0.0625, %v71_v48  ;;  %v99_v51 = vmul.f32 0.0625, %v68_v49 }
  0xb5   :  { %117 = vst.msk [vmem:[%s434_s1 + $0x48] sm:$0xff] %vm107_vm2, %v100_v50  ;;  %116 = vst.msk [vmem:[%s434_s1 + $0x40] sm:$0xff] %vm107_vm2, %v99_v51 }
  0xb6   :  { %v77_v52 = vpop.xlane.xlu1 %76  ;;  %v74_v53 = vpop.xlane.xlu0 %73 }
  0xb7   :  { %v102_v54 = vmul.f32 0.0625, %v77_v52  ;;  %v101_v55 = vmul.f32 0.0625, %v74_v53 }
  0xb9   :  { %119 = vst.msk [vmem:[%s434_s1 + $0x58] sm:$0xff] %vm107_vm2, %v102_v54  ;;  %118 = vst.msk [vmem:[%s434_s1 + $0x50] sm:$0xff] %vm107_vm2, %v101_v55 }
  0xba   :  { %v83_v56 = vpop.xlane.xlu1 %82  ;;  %v80_v57 = vpop.xlane.xlu0 %79 }
  0xbb   :  { %v104_v58 = vmul.f32 0.0625, %v83_v56  ;;  %v103_v59 = vmul.f32 0.0625, %v80_v57 }
  0xbd   :  { %121 = vst.msk [vmem:[%s434_s1 + $0x68] sm:$0xff] %vm107_vm2, %v104_v58  ;;  %120 = vst.msk [vmem:[%s434_s1 + $0x60] sm:$0xff] %vm107_vm2, %v103_v59 }
  0xbe   :  { %v89_v60 = vpop.xlane.xlu1 %88  ;;  %v86_v61 = vpop.xlane.xlu0 %85 }
  0xbf   :  { %v106_v62 = vmul.f32 0.0625, %v89_v60  ;;  %v105_v63 = vmul.f32 0.0625, %v86_v61 }
  0xc1   :  { %123 = vst.msk [vmem:[%s434_s1 + $0x78] sm:$0xff] %vm107_vm2, %v106_v62  ;;  %122 = vst.msk [vmem:[%s434_s1 + $0x70] sm:$0xff] %vm107_vm2, %v105_v63 }
  0xc2   :  { %270 = dma.done.wait [#allocation4], 128  }
  0xc3   :  { %271 = vsyncadd [#allocation4], 4294967168 }
  0xc4   :  { %216 = vsyncpa [#allocation3], 1 }
  0xc5   :  { %217 = vsyncpa [#allocation4], 1 }

</bundles_post_ra>
